<compile_context>
chip_gen: v6e
topology: v6e:2x2x1
jax: 0.10.0
libtpu: 0.0.40
codegen_flags: <defaults>
</compile_context>

<pallas_src>
import functools

import jax
import jax.numpy as jnp
from jax import lax
from jax.experimental import pallas as pl
from jax.experimental.pallas import tpu as pltpu

_EPS = 1e-6  # F.pairwise_distance default eps (added to the difference, as in PyTorch)


def _contrastive_kernel(o1_ref, o2_ref, lbl_ref, psum_ref, *, margin, true_b, block_b):
    i = pl.program_id(0)

    # Cast at load (inputs may be bf16/f16); all arithmetic in f32.
    o1 = o1_ref[...].astype(jnp.float32)                      # (TB, D)
    o2 = o2_ref[...].astype(jnp.float32)                      # (TB, D)
    diff = o1 - o2 + _EPS
    sq = jnp.sum(diff * diff, axis=-1, keepdims=True)         # (TB, 1)  lane (XLU) reduce
    dist = jnp.sqrt(sq)                                        # sqrt only needed for hinge
    hinge = jnp.maximum(margin - dist, 0.0)
    hinge2 = hinge * hinge
    same = lbl_ref[...].astype(jnp.float32)                    # (TB, 1)
    # == same * sq + (1 - same) * hinge2, exact for arbitrary label values.
    per_row = hinge2 + same * (sq - hinge2)                    # (TB, 1)

    # Mask OOB rows of the last (partial) tile before the cross-row reduce.
    # jnp.where is a select, so garbage/NaN in padded rows cannot poison the sum.
    row = lax.broadcasted_iota(jnp.int32, per_row.shape, 0) + i * block_b
    per_row = jnp.where(row < true_b, per_row, 0.0)

    partial = jnp.sum(per_row)                                 # scalar per tile
    out_row = lax.broadcasted_iota(jnp.int32, psum_ref.shape, 0)
    # (8, 1) output block: partial in row 0, zeros elsewhere (keeps block (8,128)-legal).
    psum_ref[...] = jnp.where(out_row == 0, partial, 0.0)


def _vmem_budget():
    """(input double-buffer budget, scoped vmem limit) in bytes, generation-aware."""
    cap = None
    try:
        cap = getattr(pltpu.get_tpu_info(), "vmem_capacity_bytes", None)
    except Exception:  # pragma: no cover - defensive (older jax / non-TPU tracing)
        cap = None
    if cap is None or cap <= 64 * 1024 * 1024:
        # v7x (64 MiB physical per TC) or unknown: stay conservative.
        return 36 * 1024 * 1024, 48 * 1024 * 1024
    # v5e / v6e: 128 MiB physical VMEM -> use roughly half for the input double-buffers.
    return 64 * 1024 * 1024, 96 * 1024 * 1024


def _pick_block_b(B, D, itemsize, tile_budget):
    """Batch-tile height (rows). Sized purely from the VMEM double-buffer budget, capped
    at ceil(B/2) (rounded to 128) so there are always >= 2 tiles when B > 128 (v7x: both
    TensorCores stream HBM). For B <= 128 a single full-array tile is used (no constraint
    issues, and splitting that little work across cores is pure overhead)."""
    if B <= 128:
        return B
    # Per-row VMEM bytes: 2 inputs x 2 pipeline buffers x D elems, plus the (tb, 1) label
    # block which is padded to a full (8, 128) lane tile in VMEM (512 B/row/buffer).
    per_row = 2 * 2 * D * itemsize + 2 * 512
    tb = max(128, (tile_budget // per_row) // 128 * 128)
    half = (((B + 1) // 2) + 127) // 128 * 128        # ceil(B/2) rounded up to 128
    return int(min(tb, half))


def make_contrastive_loss(margin: float = 2.0, block_b=None):
    tile_budget, vmem_limit = _vmem_budget()

    @jax.jit
    def fn(output1, output2, label):
        assert output1.shape == output2.shape and output1.ndim == 2
        B, D = output1.shape

        lbl = label.reshape(B, 1)                     # per-row label on the sublane axis

        tb = block_b if block_b is not None else _pick_block_b(
            B, D, output1.dtype.itemsize, tile_budget)
        num_tiles = pl.cdiv(B, tb)

        partials = pl.pallas_call(
            functools.partial(_contrastive_kernel,
                              margin=float(margin), true_b=B, block_b=int(tb)),
            out_shape=jax.ShapeDtypeStruct((num_tiles * 8, 1), jnp.float32),
            grid=(num_tiles,),
            in_specs=[
                pl.BlockSpec((tb, D), lambda i: (i, 0)),
                pl.BlockSpec((tb, D), lambda i: (i, 0)),
                pl.BlockSpec((tb, 1), lambda i: (i, 0)),
            ],
            out_specs=pl.BlockSpec((8, 1), lambda i: (i, 0)),
            compiler_params=pltpu.CompilerParams(
                dimension_semantics=("parallel",),     # independent tiles: megacore OK
                vmem_limit_bytes=vmem_limit,
            ),
        )(output1, output2, lbl)

        # Tiny epilogue: sum of num_tiles partials, divided by the true batch size.
        return jnp.sum(partials) / jnp.float32(B)

    return fn


def _reference(output1, output2, label, margin=2.0):
    o1 = output1.astype(jnp.float32)
    o2 = output2.astype(jnp.float32)
    diff = o1 - o2 + _EPS
    dist = jnp.sqrt(jnp.sum(diff * diff, axis=-1))
    same = label.astype(jnp.float32)
    return jnp.mean(same * dist ** 2 + (1.0 - same) * jnp.maximum(margin - dist, 0.0) ** 2)


def _check(loss_fn, key, B, D, dtype, margin):
    k1, k2, k3 = jax.random.split(key, 3)
    o1 = jax.random.normal(k1, (B, D), dtype=jnp.float32).astype(dtype)
    o2 = jax.random.normal(k2, (B, D), dtype=jnp.float32).astype(dtype)
    lbl = (jax.random.uniform(k3, (B,)) > 0.5).astype(jnp.float32)
    got = jax.block_until_ready(loss_fn(o1, o2, lbl))
    ref = jax.block_until_ready(_reference(o1, o2, lbl, margin))
    assert jnp.allclose(got, ref, rtol=1e-5, atol=1e-5), (B, D, str(dtype), got, ref)


if __name__ == "__main__":
    key = jax.random.PRNGKey(0)
    keys = jax.random.split(key, 3)
    margin = 2.0

    # Small embedding pair, consistent with the module's forward (single-tile path).
    _check(make_contrastive_loss(margin), keys[0], B=8, D=32, dtype=jnp.float32, margin=margin)
    # Gridded path with a partial last batch tile (300 = 2*128 + 44) and OOB-row masking.
    _check(make_contrastive_loss(margin, block_b=128), keys[1], B=300, D=64,
           dtype=jnp.float32, margin=margin)
    # bf16 inputs, automatic tile sizing (>=2 tiles since B > 128); cast happens in-kernel.
    _check(make_contrastive_loss(margin), keys[2], B=256, D=128,
           dtype=jnp.bfloat16, margin=margin)

    print("KERNEL_OK")
</pallas_src>

<mosaic_0001>
module attributes {stable_mosaic.version = 11 : i64} {
  func.func @_contrastive_kernel(%arg0: i32, %arg1: memref<8x32xf32, #tpu.memory_space<vmem>>, %arg2: memref<8x32xf32, #tpu.memory_space<vmem>>, %arg3: memref<8x1xf32, #tpu.memory_space<vmem>>, %arg4: memref<8x1xf32, #tpu.memory_space<vmem>>) attributes {dimension_semantics = [#tpu.dimension_semantics<parallel>], iteration_bounds = array<i64: 1>, scalar_prefetch = 0 : i64, scratch_operands = 0 : i64, tpu.core_type = #tpu.core_type<tc>, window_params = [{transform_indices = @transform_0, window_bounds = array<i64: 8, 32>}, {transform_indices = @transform_1, window_bounds = array<i64: 8, 32>}, {transform_indices = @transform_2, window_bounds = array<i64: 8, 1>}, {transform_indices = @transform_3, window_bounds = array<i64: 8, 1>}]} {
    %c0 = arith.constant 0 : index
    %c0_0 = arith.constant 0 : index
    %0 = vector.load %arg1[%c0, %c0_0] : memref<8x32xf32, #tpu.memory_space<vmem>>, vector<8x32xf32>
    %c0_1 = arith.constant 0 : index
    %c0_2 = arith.constant 0 : index
    %1 = vector.load %arg2[%c0_1, %c0_2] : memref<8x32xf32, #tpu.memory_space<vmem>>, vector<8x32xf32>
    %2 = arith.subf %0, %1 : vector<8x32xf32>
    %cst = arith.constant 9.99999997E-7 : f32
    %3 = vector.broadcast %cst : f32 to vector<8x32xf32>
    %4 = arith.addf %2, %3 : vector<8x32xf32>
    %5 = arith.mulf %4, %4 : vector<8x32xf32>
    %cst_3 = arith.constant dense<0.000000e+00> : vector<8xf32>
    %6 = vector.multi_reduction <add>, %5, %cst_3 [1] : vector<8x32xf32> to vector<8xf32>
    %7 = vector.shape_cast %6 : vector<8xf32> to vector<8x1xf32>
    %8 = math.sqrt %7 : vector<8x1xf32>
    %cst_4 = arith.constant 2.000000e+00 : f32
    %9 = vector.broadcast %cst_4 : f32 to vector<8x1xf32>
    %10 = arith.subf %9, %8 : vector<8x1xf32>
    %cst_5 = arith.constant 0.000000e+00 : f32
    %11 = vector.broadcast %cst_5 : f32 to vector<8x1xf32>
    %12 = arith.maximumf %10, %11 : vector<8x1xf32>
    %13 = arith.mulf %12, %12 : vector<8x1xf32>
    %c0_6 = arith.constant 0 : index
    %c0_7 = arith.constant 0 : index
    %14 = vector.load %arg3[%c0_6, %c0_7] : memref<8x1xf32, #tpu.memory_space<vmem>>, vector<8x1xf32>
    %15 = arith.subf %7, %13 : vector<8x1xf32>
    %16 = arith.mulf %14, %15 : vector<8x1xf32>
    %17 = arith.addf %13, %16 : vector<8x1xf32>
    %18 = tpu.iota {dimensions = array<i32: 0>} : vector<8x1xi32>
    %c8_i32 = arith.constant 8 : i32
    %19 = arith.muli %arg0, %c8_i32 : i32
    %20 = vector.broadcast %19 : i32 to vector<8x1xi32>
    %21 = arith.addi %18, %20 : vector<8x1xi32>
    %c8_i32_8 = arith.constant 8 : i32
    %22 = vector.broadcast %c8_i32_8 : i32 to vector<8x1xi32>
    %23 = arith.cmpi slt, %21, %22 : vector<8x1xi32>
    %cst_9 = arith.constant 0.000000e+00 : f32
    %24 = vector.broadcast %cst_9 : f32 to vector<8x1xf32>
    %25 = arith.select %23, %17, %24 : vector<8x1xi1>, vector<8x1xf32>
    %26 = vector.shape_cast %25 : vector<8x1xf32> to vector<1x8x1xf32>
    %cst_10 = arith.constant dense<0.000000e+00> : vector<1xf32>
    %27 = vector.multi_reduction <add>, %26, %cst_10 [1, 2] : vector<1x8x1xf32> to vector<1xf32>
    %28 = vector.shape_cast %27 : vector<1xf32> to vector<1x1x1xf32>
    %29 = vector.extract %28[0, 0, 0] : f32 from vector<1x1x1xf32>
    %30 = tpu.iota {dimensions = array<i32: 0>} : vector<8x1xi32>
    %c0_i32 = arith.constant 0 : i32
    %31 = vector.broadcast %c0_i32 : i32 to vector<8x1xi32>
    %32 = arith.cmpi eq, %30, %31 : vector<8x1xi32>
    %cst_11 = arith.constant 0.000000e+00 : f32
    %33 = vector.broadcast %29 : f32 to vector<8x1xf32>
    %34 = vector.broadcast %cst_11 : f32 to vector<8x1xf32>
    %35 = arith.select %32, %33, %34 : vector<8x1xi1>, vector<8x1xf32>
    %c0_12 = arith.constant 0 : index
    %c0_13 = arith.constant 0 : index
    %36 = vector.load %arg4[%c0_12, %c0_13] : memref<8x1xf32, #tpu.memory_space<vmem>>, vector<8x1xf32>
    tpu.vector_store %arg4[%c0_12, %c0_13], %35 {strides = array<i32>} : memref<8x1xf32, #tpu.memory_space<vmem>>, vector<8x1xf32>,
    return
  }
  func.func @transform_0(%arg0: i32) -> (i32, i32) {
    %c0_i32 = arith.constant 0 : i32
    %c0_i32_0 = arith.constant 0 : i32
    return %arg0, %c0_i32 : i32, i32
  }
  func.func @transform_1(%arg0: i32) -> (i32, i32) {
    %c0_i32 = arith.constant 0 : i32
    %c0_i32_0 = arith.constant 0 : i32
    return %arg0, %c0_i32 : i32, i32
  }
  func.func @transform_2(%arg0: i32) -> (i32, i32) {
    %c0_i32 = arith.constant 0 : i32
    %c0_i32_0 = arith.constant 0 : i32
    return %arg0, %c0_i32 : i32, i32
  }
  func.func @transform_3(%arg0: i32) -> (i32, i32) {
    %c0_i32 = arith.constant 0 : i32
    %c0_i32_0 = arith.constant 0 : i32
    return %arg0, %c0_i32 : i32, i32
  }
}

</mosaic_0001>

<bundles_post_ra>
// kernel: fn.1
= control target key start
LH: loop header
LB: loop body
LE: loop exit
PB: predicated region body
PF: predicated region fallthrough
CT: control target
= control target key end

     0   :  { %8 = vsyncpa [#allocation3], 0  ;;  %s103_s12 = smov [#allocation2]   ;;  %s138_s0 = inlined_call_operand.vmem [shape: f32[8,32], index: 0, kind: input, shape index: {}]   ;;  %s139_s1 = inlined_call_operand.hbm [shape: f32[8,32], index: 1, kind: input, shape index: {}]   ;;  %s140_s2 = inlined_call_operand.vmem [shape: f32[8,1], index: 2, kind: input, shape index: {}]   ;;  %s141_s3 = inlined_call_operand.vmem [shape: f32[8,1], index: 3, kind: output, shape index: {}]  }
   0x1   :  { %s17_s13 = sshll.u32 %s103_s12, 4  ;;  %s18_s13 = int_to_ptr.vmem [resolvable:$true] %s17_s13 }
   0x2   :  { %s89_s14 = scalar_lea.vmem %s18_s13, 128  ;;  %p94_p1 = scmp.lt.s32.totalorder %s18_s13, %s18_s13 }
   0x3   :  { %p90_p0 = scmp.ne.s32.totalorder %s18_s13, %s89_s14  ;;  %p95_p2 = scmp.lt.s32.totalorder %s89_s14, %s89_s14 }
   0x5   :  { %p96_p3 = por %p95_p2, %p94_p1 }
   0x7   :  { %p97_p4 = pnand %p96_p3, %p90_p0 }
   0x9   :  { %100 = shalt.err (!%p97_p4)
}
   0xa   :  { %20 = dma.hbm_to_vmem [thread:$0]  %s139_s1, 128, %s18_s13, [#allocation3]  }
   0xb   :  { %101 = dma.done.wait [#allocation3], 128  }
   0xc   :  { %102 = vsyncadd [#allocation3], 4294967168  ;;  %v26_v0 = vld [vmem:[%s138_s0] sm:$0xff]  ;;  %vm31_vm0 = vcmask 261120   ;;  %vm56_vm3 = vcmask 7168   ;;  %v49_v27 = vlaneseq }
   0xd   :  { %v27_v1 = vld [vmem:[#allocation2] sm:$0xff] }
   0xe   :  { %v28_v2 = vsub.f32 %v26_v0, %v27_v1  ;;  %v45_v15 = vld [vmem:[%s140_s2] sm:$0xff]  ;;  %v50_v28 = vshrl.u32 %v49_v27, 7 }
  0x10   :  { %v29_v3 = vadd.f32 1e-06, %v28_v2  ;;  %vm67_vm4 = vcmp.eq.s32.totalorder %v50_v28, 0 }
  0x12   :  { %v30_v4 = vmul.f32 %v29_v3, %v29_v3 }
  0x14   :  { %v32_v5 = vsel %vm31_vm0, %v30_v4, 0.0 }
  0x15   :  { %33 = vadd.xlane.f32.xlu0 %v32_v5 }
  0x9e   :  { %v34_v6 = vpop.xlane.xlu0 %33 }
  0x9f   :  { %79 = vrsqrt.f32 %v34_v6  ;;  %vm37_vm1 = vcmp.eq.f32.partialorder %v34_v6, inf  ;;  %v40_v9 = vand.u32 2147483648, %v34_v6  ;;  %vm39_vm2 = vcmp.eq.f32.partialorder %v34_v6, 0.0 }
  0xac   :  { %v80_v7 = vpop.eup %79 }
  0xad   :  { %v36_v8 = vmul.f32 %v80_v7, %v34_v6 }
  0xaf   :  { %v38_v10 = vsel %vm37_vm1, %v34_v6, %v36_v8 }
  0xb0   :  { %v41_v11 = vsel %vm39_vm2, %v40_v9, %v38_v10 }
  0xb1   :  { %v42_v12 = vsub.f32 2.0, %v41_v11 }
  0xb3   :  { %v43_v13 = vmax.f32 %v42_v12, 0.0 }
  0xb5   :  { %v44_v14 = vmul.f32 %v43_v13, %v43_v13 }
  0xb7   :  { %v46_v16 = vsub.f32 %v34_v6, %v44_v14 }
  0xb9   :  { %v47_v17 = vmul.f32 %v46_v16, %v45_v15 }
  0xbb   :  { %v48_v18 = vadd.f32 %v47_v17, %v44_v14 }
  0xbd   :  { %v57_v19 = vsel %vm56_vm3, %v48_v18, 0.0 }
  0xbe   :  { %58 = vadd.xlane.f32.xlu0 %v57_v19 }
 0x147   :  { %v59_v20 = vpop.xlane.xlu0 %58 }
 0x148   :  { %v60_v21 = vrot.slane %v59_v20, 4 }
 0x14a   :  { %v61_v22 = vadd.f32 %v60_v21, %v59_v20 }
 0x14c   :  { %v62_v23 = vrot.slane %v61_v22, 2 }
 0x14e   :  { %v63_v24 = vadd.f32 %v62_v23, %v61_v22 }
 0x150   :  { %v64_v25 = vrot.slane %v63_v24, 1 }
 0x152   :  { %v65_v26 = vadd.f32 %v64_v25, %v63_v24 }
 0x154   :  { %76 = vpush %v65_v26 }
 0x185   :  { %s77_s19 = spop %76 }
 0x186   :  { %v68_v29 = vstv %s77_s19 }
 0x187   :  { %v69_v30 = vsel %vm67_vm4, %v68_v29, 0.0 }
 0x188   :  { %70 = vst.msk [vmem:[%s141_s3] sm:$0xff] %vm56_vm3, %v69_v30 }
 0x189   :  { %75 = vsyncpa [#allocation3], 1 }

</bundles_post_ra>
